<compile_context>
chip_gen: v7x
topology: tpu7x:2x2x1
jax: 0.10.0
libtpu: 0.0.40
codegen_flags: <defaults>
</compile_context>

<pallas_src>
import numpy as np
import jax
import jax.numpy as jnp
from jax.experimental import pallas as pl
from jax.experimental.pallas import tpu as pltpu

ACTION_LIST = np.arange(-1, 1, 0.05)
N_ACTIONS = len(ACTION_LIST)   # 40
IN_DIM = 4
HIDDEN = 128

OUT_PAD = 128     # pad final layer to a lane-dense 128-wide output
MAX_TILE_B = 512  # upper bound on batch tile (sweep 512-1024 on real HW)
NEG_INF = -1e30   # padded output lanes get this bias -> ~0 softmax mass


def mlp_softmax_kernel(x_ref, w1_ref, b1_ref, w2_ref, b2_ref,
                       w3_ref, b3_ref, w4_ref, b4_ref, out_ref):
    # ---- fc1 (NO relu, matches Model_1.forward) -------------------------
    # K=4 contraction done on the VPU as 4 broadcast FMAs in f32: avoids a
    # 97%-padded MXU pass and lets x come in as (tile_b, 4) with no padding.
    x = x_ref[...]                      # [tile_b, 4]  f32
    w1 = w1_ref[...]                    # [4, 128]     f32
    h = b1_ref[...]                     # [1, 128]     f32 (broadcast over rows)
    for i in range(IN_DIM):             # static unroll, 4 iterations
        h = h + x[:, i:i + 1] * w1[i:i + 1, :]

    # ---- relu(fc2), relu(fc3): bf16 operands, f32 MXU accumulation ------
    h = jnp.dot(h.astype(jnp.bfloat16), w2_ref[...],
                preferred_element_type=jnp.float32) + b2_ref[...]
    h = jnp.maximum(h, 0.0)
    h = jnp.dot(h.astype(jnp.bfloat16), w3_ref[...],
                preferred_element_type=jnp.float32) + b3_ref[...]
    h = jnp.maximum(h, 0.0)

    # ---- fc4 (lane-padded to 128 cols; padded bias lanes hold -1e30) ----
    logits = jnp.dot(h.astype(jnp.bfloat16), w4_ref[...],
                     preferred_element_type=jnp.float32) + b4_ref[...]

    # ---- numerically stable softmax, all f32, exact divide --------------
    m = jnp.max(logits, axis=-1, keepdims=True)
    e = jnp.exp(logits - m)                       # padded lanes underflow to 0
    denom = jnp.sum(e, axis=-1, keepdims=True)
    out_ref[...] = (e / denom).astype(out_ref.dtype)


def _prep_params(params):
    """Cast / pad logical params to MXU- and lane-friendly shapes.

    Weights of the three 128-wide matmuls go to bf16 (f32 accumulate in the
    kernel); fc1 weight and all biases (incl. the -1e30 pad) stay f32.
    """
    w1, b1, w2, b2, w3, b3, w4, b4 = params
    w4p = jnp.zeros((HIDDEN, OUT_PAD), jnp.float32).at[:, :N_ACTIONS].set(w4)
    b4p = jnp.full((1, OUT_PAD), NEG_INF, jnp.float32).at[:, :N_ACTIONS].set(b4)
    return (w1.astype(jnp.float32), b1.astype(jnp.float32),
            w2.astype(jnp.bfloat16), b2.astype(jnp.float32),
            w3.astype(jnp.bfloat16), b3.astype(jnp.float32),
            w4p.astype(jnp.bfloat16), b4p)


def _choose_tile_b(batch):
    """Pick a batch tile: big enough to amortize per-step pipeline overhead,
    but keep >=2 grid steps when the batch allows (v7x has 2 TensorCores)."""
    if batch <= 8:
        return batch                      # one tile equal to the full tiny batch
    half = -(-batch // 2)                 # ceil(batch / 2)
    return max(8, min(MAX_TILE_B, ((half + 7) // 8) * 8))


def model1_forward_padded(x, params):
    """x: [B, 4] f32 -> [B, 128] f32 (softmax probs in cols [:40], ~0 elsewhere).

    Returned padded so callers can fuse downstream work and skip the extra
    HBM slice pass (dominant output-bandwidth cost on v5e)."""
    B = x.shape[0]
    w1, b1, w2, b2, w3, b3, w4, b4 = _prep_params(params)

    tile_b = _choose_tile_b(B)
    n_tiles = pl.cdiv(B, tile_b)

    const = lambda i: (0, 0)
    grid_spec = pltpu.PrefetchScalarGridSpec(
        num_scalar_prefetch=0,
        grid=(n_tiles,),
        in_specs=[
            pl.BlockSpec((tile_b, IN_DIM), lambda i: (i, 0)),   # x (streamed)
            pl.BlockSpec((IN_DIM, HIDDEN), const),              # w1 (resident)
            pl.BlockSpec((1, HIDDEN), const),                   # b1
            pl.BlockSpec((HIDDEN, HIDDEN), const),              # w2
            pl.BlockSpec((1, HIDDEN), const),                   # b2
            pl.BlockSpec((HIDDEN, HIDDEN), const),              # w3
            pl.BlockSpec((1, HIDDEN), const),                   # b3
            pl.BlockSpec((HIDDEN, OUT_PAD), const),             # w4
            pl.BlockSpec((1, OUT_PAD), const),                  # b4
        ],
        out_specs=pl.BlockSpec((tile_b, OUT_PAD), lambda i: (i, 0)),
    )

    flops_per_row = 2 * (IN_DIM * HIDDEN + 2 * HIDDEN * HIDDEN + HIDDEN * OUT_PAD)
    weight_bytes = sum(int(np.prod(p.shape)) * p.dtype.itemsize
                       for p in (w1, b1, w2, b2, w3, b3, w4, b4))
    cost = pl.CostEstimate(
        flops=int(B * flops_per_row),
        transcendentals=int(B * OUT_PAD),
        bytes_accessed=int(4 * B * (IN_DIM + OUT_PAD) + weight_bytes),
    )

    return pl.pallas_call(
        mlp_softmax_kernel,
        out_shape=jax.ShapeDtypeStruct((B, OUT_PAD), jnp.float32),
        grid_spec=grid_spec,
        compiler_params=pltpu.CompilerParams(
            dimension_semantics=("parallel",),
            vmem_limit_bytes=32 * 1024 * 1024,
        ),
        cost_estimate=cost,
    )(x, w1, b1, w2, b2, w3, b3, w4, b4)


def model1_forward(x, params):
    """x: [B, 4] f32 -> [B, 40] f32 softmax probs (logical module output)."""
    return model1_forward_padded(x, params)[:, :N_ACTIONS]


def init_params(key):
    """Deterministic init mimicking nn.Linear default (uniform +-1/sqrt(fan_in)).
    Logical shapes: weights [in, out] (transposed vs PyTorch), biases [1, out]."""
    dims = [(IN_DIM, HIDDEN), (HIDDEN, HIDDEN), (HIDDEN, HIDDEN), (HIDDEN, N_ACTIONS)]
    params = []
    for (fan_in, fan_out) in dims:
        key, kw, kb = jax.random.split(key, 3)
        bound = 1.0 / np.sqrt(fan_in)
        w = jax.random.uniform(kw, (fan_in, fan_out), jnp.float32, -bound, bound)
        b = jax.random.uniform(kb, (1, fan_out), jnp.float32, -bound, bound)
        params.extend([w, b])
    return tuple(params)


def reference_forward_f32(x, params):
    """Pure f32 reference (matches the PyTorch module bit-for-bit in spirit)."""
    w1, b1, w2, b2, w3, b3, w4, b4 = params
    h = x @ w1 + b1
    h = jax.nn.relu(h @ w2 + b2)
    h = jax.nn.relu(h @ w3 + b3)
    logits = h @ w4 + b4
    return jax.nn.softmax(logits, axis=-1)


def reference_forward_bf16(x, params):
    """Reference matching the kernel's numerics (bf16 matmul operands, f32 accum)."""
    w1, b1, w2, b2, w3, b3, w4, b4 = params
    h = x @ w1 + b1
    h = jax.nn.relu(jnp.dot(h.astype(jnp.bfloat16), w2.astype(jnp.bfloat16),
                            preferred_element_type=jnp.float32) + b2)
    h = jax.nn.relu(jnp.dot(h.astype(jnp.bfloat16), w3.astype(jnp.bfloat16),
                            preferred_element_type=jnp.float32) + b3)
    logits = jnp.dot(h.astype(jnp.bfloat16), w4.astype(jnp.bfloat16),
                     preferred_element_type=jnp.float32) + b4
    return jax.nn.softmax(logits, axis=-1)


if __name__ == "__main__":
    key = jax.random.PRNGKey(0)
    key, kx = jax.random.split(key)
    B = 64                                             # small demo batch of cartpole states
    x = jax.random.normal(kx, (B, IN_DIM), jnp.float32)
    params = init_params(key)

    out = jax.block_until_ready(model1_forward(x, params))
    assert out.shape == (B, N_ACTIONS)

    ref32 = reference_forward_f32(x, params)
    refbf = reference_forward_bf16(x, params)

    # Tight check against the precision-matched (bf16-operand) reference.
    np.testing.assert_allclose(np.asarray(out), np.asarray(refbf),
                               rtol=5e-3, atol=1e-6)
    # Loose (bf16-appropriate) check against the exact f32 module semantics.
    np.testing.assert_allclose(np.asarray(out), np.asarray(ref32),
                               rtol=2e-2, atol=2e-3)
    # Softmax rows must sum to 1 (exact divide in f32).
    np.testing.assert_allclose(np.asarray(out).sum(axis=-1), np.ones(B),
                               rtol=1e-4, atol=1e-4)

    # Ragged batch exercising a partial last grid block (no wrapper padding).
    out_ragged = jax.block_until_ready(model1_forward(x[:10], params))
    np.testing.assert_allclose(np.asarray(out_ragged), np.asarray(ref32)[:10],
                               rtol=2e-2, atol=2e-3)

    print("KERNEL_OK")
</pallas_src>

<mosaic_0001>
module attributes {stable_mosaic.version = 11 : i64} {
  func.func @mlp_softmax_kernel(%arg0: i32, %arg1: memref<32x4xf32, #tpu.memory_space<vmem>>, %arg2: memref<4x128xf32, #tpu.memory_space<vmem>>, %arg3: memref<1x128xf32, #tpu.memory_space<vmem>>, %arg4: memref<128x128xbf16, #tpu.memory_space<vmem>>, %arg5: memref<1x128xf32, #tpu.memory_space<vmem>>, %arg6: memref<128x128xbf16, #tpu.memory_space<vmem>>, %arg7: memref<1x128xf32, #tpu.memory_space<vmem>>, %arg8: memref<128x128xbf16, #tpu.memory_space<vmem>>, %arg9: memref<1x128xf32, #tpu.memory_space<vmem>>, %arg10: memref<32x128xf32, #tpu.memory_space<vmem>>) attributes {dimension_semantics = [#tpu.dimension_semantics<parallel>], iteration_bounds = array<i64: 2>, scalar_prefetch = 0 : i64, scratch_operands = 0 : i64, tpu.core_type = #tpu.core_type<tc>, window_params = [{transform_indices = @transform_0, window_bounds = array<i64: 32, 4>}, {pipeline_mode = #tpu.pipeline_mode<synchronous>, transform_indices = @transform_1, window_bounds = array<i64: 4, 128>}, {pipeline_mode = #tpu.pipeline_mode<synchronous>, transform_indices = @transform_2, window_bounds = array<i64: 1, 128>}, {pipeline_mode = #tpu.pipeline_mode<synchronous>, transform_indices = @transform_3, window_bounds = array<i64: 128, 128>}, {pipeline_mode = #tpu.pipeline_mode<synchronous>, transform_indices = @transform_4, window_bounds = array<i64: 1, 128>}, {pipeline_mode = #tpu.pipeline_mode<synchronous>, transform_indices = @transform_5, window_bounds = array<i64: 128, 128>}, {pipeline_mode = #tpu.pipeline_mode<synchronous>, transform_indices = @transform_6, window_bounds = array<i64: 1, 128>}, {pipeline_mode = #tpu.pipeline_mode<synchronous>, transform_indices = @transform_7, window_bounds = array<i64: 128, 128>}, {pipeline_mode = #tpu.pipeline_mode<synchronous>, transform_indices = @transform_8, window_bounds = array<i64: 1, 128>}, {transform_indices = @transform_9, window_bounds = array<i64: 32, 128>}]} {
    %c0 = arith.constant 0 : index
    %c0_0 = arith.constant 0 : index
    %0 = vector.load %arg1[%c0, %c0_0] : memref<32x4xf32, #tpu.memory_space<vmem>>, vector<32x4xf32>
    %c0_1 = arith.constant 0 : index
    %c0_2 = arith.constant 0 : index
    %1 = vector.load %arg2[%c0_1, %c0_2] : memref<4x128xf32, #tpu.memory_space<vmem>>, vector<4x128xf32>
    %c0_3 = arith.constant 0 : index
    %c0_4 = arith.constant 0 : index
    %2 = vector.load %arg3[%c0_3, %c0_4] : memref<1x128xf32, #tpu.memory_space<vmem>>, vector<1x128xf32>
    %3 = vector.extract_strided_slice %0 {offsets = [0, 0], sizes = [32, 1], strides = [1, 1]} : vector<32x4xf32> to vector<32x1xf32>
    %4 = vector.extract_strided_slice %1 {offsets = [0, 0], sizes = [1, 128], strides = [1, 1]} : vector<4x128xf32> to vector<1x128xf32>
    %5 = vector.broadcast %3 : vector<32x1xf32> to vector<32x128xf32>
    %6 = vector.broadcast %4 : vector<1x128xf32> to vector<32x128xf32>
    %7 = arith.mulf %5, %6 : vector<32x128xf32>
    %8 = vector.broadcast %2 : vector<1x128xf32> to vector<32x128xf32>
    %9 = arith.addf %8, %7 : vector<32x128xf32>
    %10 = vector.extract_strided_slice %0 {offsets = [0, 1], sizes = [32, 1], strides = [1, 1]} : vector<32x4xf32> to vector<32x1xf32>
    %11 = vector.extract_strided_slice %1 {offsets = [1, 0], sizes = [1, 128], strides = [1, 1]} : vector<4x128xf32> to vector<1x128xf32>
    %12 = vector.broadcast %10 : vector<32x1xf32> to vector<32x128xf32>
    %13 = vector.broadcast %11 : vector<1x128xf32> to vector<32x128xf32>
    %14 = arith.mulf %12, %13 : vector<32x128xf32>
    %15 = arith.addf %9, %14 : vector<32x128xf32>
    %16 = vector.extract_strided_slice %0 {offsets = [0, 2], sizes = [32, 1], strides = [1, 1]} : vector<32x4xf32> to vector<32x1xf32>
    %17 = vector.extract_strided_slice %1 {offsets = [2, 0], sizes = [1, 128], strides = [1, 1]} : vector<4x128xf32> to vector<1x128xf32>
    %18 = vector.broadcast %16 : vector<32x1xf32> to vector<32x128xf32>
    %19 = vector.broadcast %17 : vector<1x128xf32> to vector<32x128xf32>
    %20 = arith.mulf %18, %19 : vector<32x128xf32>
    %21 = arith.addf %15, %20 : vector<32x128xf32>
    %22 = vector.extract_strided_slice %0 {offsets = [0, 3], sizes = [32, 1], strides = [1, 1]} : vector<32x4xf32> to vector<32x1xf32>
    %23 = vector.extract_strided_slice %1 {offsets = [3, 0], sizes = [1, 128], strides = [1, 1]} : vector<4x128xf32> to vector<1x128xf32>
    %24 = vector.broadcast %22 : vector<32x1xf32> to vector<32x128xf32>
    %25 = vector.broadcast %23 : vector<1x128xf32> to vector<32x128xf32>
    %26 = arith.mulf %24, %25 : vector<32x128xf32>
    %27 = arith.addf %21, %26 : vector<32x128xf32>
    %28 = arith.truncf %27 : vector<32x128xf32> to vector<32x128xbf16>
    %c0_5 = arith.constant 0 : index
    %c0_6 = arith.constant 0 : index
    %29 = vector.load %arg4[%c0_5, %c0_6] : memref<128x128xbf16, #tpu.memory_space<vmem>>, vector<128x128xbf16>
    %cst = arith.constant dense<0.000000e+00> : vector<32x128xf32>
    %30 = tpu.matmul %28, %29, %cst {dimension_numbers = #tpu.dot_dimension_numbers<[1], [0], [0], [1], [0, 0, 1, 1], [], []>} : vector<32x128xbf16>, vector<128x128xbf16>, vector<32x128xf32> -> vector<32x128xf32>
    %c0_7 = arith.constant 0 : index
    %c0_8 = arith.constant 0 : index
    %31 = vector.load %arg5[%c0_7, %c0_8] : memref<1x128xf32, #tpu.memory_space<vmem>>, vector<1x128xf32>
    %32 = vector.broadcast %31 : vector<1x128xf32> to vector<32x128xf32>
    %33 = arith.addf %30, %32 : vector<32x128xf32>
    %cst_9 = arith.constant 0.000000e+00 : f32
    %34 = vector.broadcast %cst_9 : f32 to vector<32x128xf32>
    %35 = arith.maximumf %33, %34 : vector<32x128xf32>
    %36 = arith.truncf %35 : vector<32x128xf32> to vector<32x128xbf16>
    %c0_10 = arith.constant 0 : index
    %c0_11 = arith.constant 0 : index
    %37 = vector.load %arg6[%c0_10, %c0_11] : memref<128x128xbf16, #tpu.memory_space<vmem>>, vector<128x128xbf16>
    %cst_12 = arith.constant dense<0.000000e+00> : vector<32x128xf32>
    %38 = tpu.matmul %36, %37, %cst_12 {dimension_numbers = #tpu.dot_dimension_numbers<[1], [0], [0], [1], [0, 0, 1, 1], [], []>} : vector<32x128xbf16>, vector<128x128xbf16>, vector<32x128xf32> -> vector<32x128xf32>
    %c0_13 = arith.constant 0 : index
    %c0_14 = arith.constant 0 : index
    %39 = vector.load %arg7[%c0_13, %c0_14] : memref<1x128xf32, #tpu.memory_space<vmem>>, vector<1x128xf32>
    %40 = vector.broadcast %39 : vector<1x128xf32> to vector<32x128xf32>
    %41 = arith.addf %38, %40 : vector<32x128xf32>
    %cst_15 = arith.constant 0.000000e+00 : f32
    %42 = vector.broadcast %cst_15 : f32 to vector<32x128xf32>
    %43 = arith.maximumf %41, %42 : vector<32x128xf32>
    %44 = arith.truncf %43 : vector<32x128xf32> to vector<32x128xbf16>
    %c0_16 = arith.constant 0 : index
    %c0_17 = arith.constant 0 : index
    %45 = vector.load %arg8[%c0_16, %c0_17] : memref<128x128xbf16, #tpu.memory_space<vmem>>, vector<128x128xbf16>
    %cst_18 = arith.constant dense<0.000000e+00> : vector<32x128xf32>
    %46 = tpu.matmul %44, %45, %cst_18 {dimension_numbers = #tpu.dot_dimension_numbers<[1], [0], [0], [1], [0, 0, 1, 1], [], []>} : vector<32x128xbf16>, vector<128x128xbf16>, vector<32x128xf32> -> vector<32x128xf32>
    %c0_19 = arith.constant 0 : index
    %c0_20 = arith.constant 0 : index
    %47 = vector.load %arg9[%c0_19, %c0_20] : memref<1x128xf32, #tpu.memory_space<vmem>>, vector<1x128xf32>
    %48 = vector.broadcast %47 : vector<1x128xf32> to vector<32x128xf32>
    %49 = arith.addf %46, %48 : vector<32x128xf32>
    %cst_21 = arith.constant dense<0xFF800000> : vector<32xf32>
    %50 = vector.multi_reduction <maximumf>, %49, %cst_21 [1] : vector<32x128xf32> to vector<32xf32>
    %51 = vector.shape_cast %50 : vector<32xf32> to vector<32x1xf32>
    %52 = vector.broadcast %51 : vector<32x1xf32> to vector<32x128xf32>
    %53 = arith.subf %49, %52 : vector<32x128xf32>
    %54 = math.exp %53 : vector<32x128xf32>
    %cst_22 = arith.constant dense<0.000000e+00> : vector<32xf32>
    %55 = vector.multi_reduction <add>, %54, %cst_22 [1] : vector<32x128xf32> to vector<32xf32>
    %56 = vector.shape_cast %55 : vector<32xf32> to vector<32x1xf32>
    %57 = vector.broadcast %56 : vector<32x1xf32> to vector<32x128xf32>
    %58 = arith.divf %54, %57 : vector<32x128xf32>
    %c0_23 = arith.constant 0 : index
    %c0_24 = arith.constant 0 : index
    %59 = vector.load %arg10[%c0_23, %c0_24] : memref<32x128xf32, #tpu.memory_space<vmem>>, vector<32x128xf32>
    tpu.vector_store %arg10[%c0_23, %c0_24], %58 {strides = array<i32>} : memref<32x128xf32, #tpu.memory_space<vmem>>, vector<32x128xf32>,
    return
  }
  func.func @transform_0(%arg0: i32) -> (i32, i32) {
    %c0_i32 = arith.constant 0 : i32
    %c0_i32_0 = arith.constant 0 : i32
    return %arg0, %c0_i32 : i32, i32
  }
  func.func @transform_1(%arg0: i32) -> (i32, i32) {
    %c0_i32 = arith.constant 0 : i32
    %c0_i32_0 = arith.constant 0 : i32
    %c0_i32_1 = arith.constant 0 : i32
    return %c0_i32, %c0_i32_0 : i32, i32
  }
  func.func @transform_2(%arg0: i32) -> (i32, i32) {
    %c0_i32 = arith.constant 0 : i32
    %c0_i32_0 = arith.constant 0 : i32
    %c0_i32_1 = arith.constant 0 : i32
    return %c0_i32, %c0_i32_0 : i32, i32
  }
  func.func @transform_3(%arg0: i32) -> (i32, i32) {
    %c0_i32 = arith.constant 0 : i32
    %c0_i32_0 = arith.constant 0 : i32
    %c0_i32_1 = arith.constant 0 : i32
    return %c0_i32, %c0_i32_0 : i32, i32
  }
  func.func @transform_4(%arg0: i32) -> (i32, i32) {
    %c0_i32 = arith.constant 0 : i32
    %c0_i32_0 = arith.constant 0 : i32
    %c0_i32_1 = arith.constant 0 : i32
    return %c0_i32, %c0_i32_0 : i32, i32
  }
  func.func @transform_5(%arg0: i32) -> (i32, i32) {
    %c0_i32 = arith.constant 0 : i32
    %c0_i32_0 = arith.constant 0 : i32
    %c0_i32_1 = arith.constant 0 : i32
    return %c0_i32, %c0_i32_0 : i32, i32
  }
  func.func @transform_6(%arg0: i32) -> (i32, i32) {
    %c0_i32 = arith.constant 0 : i32
    %c0_i32_0 = arith.constant 0 : i32
    %c0_i32_1 = arith.constant 0 : i32
    return %c0_i32, %c0_i32_0 : i32, i32
  }
  func.func @transform_7(%arg0: i32) -> (i32, i32) {
    %c0_i32 = arith.constant 0 : i32
    %c0_i32_0 = arith.constant 0 : i32
    %c0_i32_1 = arith.constant 0 : i32
    return %c0_i32, %c0_i32_0 : i32, i32
  }
  func.func @transform_8(%arg0: i32) -> (i32, i32) {
    %c0_i32 = arith.constant 0 : i32
    %c0_i32_0 = arith.constant 0 : i32
    %c0_i32_1 = arith.constant 0 : i32
    return %c0_i32, %c0_i32_0 : i32, i32
  }
  func.func @transform_9(%arg0: i32) -> (i32, i32) {
    %c0_i32 = arith.constant 0 : i32
    %c0_i32_0 = arith.constant 0 : i32
    return %arg0, %c0_i32 : i32, i32
  }
}

</mosaic_0001>

<bundles_post_ra>
// kernel: tpu_custom_call.1
= control target key start
LH: loop header
LB: loop body
LE: loop exit
PB: predicated region body
PF: predicated region fallthrough
CT: control target
= control target key end

     0   :  { %14 = vsyncpa [#allocation3], 0  ;;  %s1658_s0 = inlined_call_operand.vmem [shape: f32[64,4], index: 0, kind: input, shape index: {}]   ;;  %s1659_s1 = inlined_call_operand.vmem [shape: f32[4,128], index: 1, kind: input, shape index: {}]   ;;  %s1660_s2 = inlined_call_operand.vmem [shape: f32[1,128], index: 2, kind: input, shape index: {}]   ;;  %s1661_s3 = inlined_call_operand.vmem [shape: bf16[128,128], index: 3, kind: input, shape index: {}]   ;;  %s1662_s4 = inlined_call_operand.vmem [shape: f32[1,128], index: 4, kind: input, shape index: {}]   ;;  %s1663_s5 = inlined_call_operand.hbm [shape: bf16[128,128], index: 5, kind: input, shape index: {}]   ;;  %s1664_s6 = inlined_call_operand.vmem [shape: f32[1,128], index: 6, kind: input, shape index: {}]   ;;  %s1665_s7 = inlined_call_operand.hbm [shape: bf16[128,128], index: 7, kind: input, shape index: {}]   ;;  %s1666_s8 = inlined_call_operand.vmem [shape: f32[1,128], index: 8, kind: input, shape index: {}]   ;;  %s1667_s9 = inlined_call_operand.hbm [shape: f32[64,128], index: 9, kind: output, shape index: {}]  }
   0x1   :  { %15 = vsyncpa [#allocation6], 0 }
   0x2   :  { %16 = vsyncpa [#allocation4], 0 }
   0x3   :  { %18 = vsyncpa [#allocation4 + $0x1], 0  ;;  %s1445_s30 = smov 0   ;;  %s1447_s10 = smov 0  }
   0x4   :  { %s1449_s11 = smov 0   ;;  %s1451_s12 = smov 0  }
   0x5 LB: > { %1674 = sst [smem:[#allocation11_spill]] %s1378_s11  ;;  %s1466_s13 = sadd.s32 4294967295, %s1382_s12   ;;  %s1382_s12 = sphi %s1451_s12, %s1688_s12   ;;  %s1378_s11 = sphi %s1449_s11, %s1690_s11   ;;  %s1374_s10 = sphi %s1447_s10, %s1692_s10   ;;  %s1370_s30 = sphi %s1445_s30, %s1691_s30  }
   0x6   : > { %s1005_s14 = sadd.s32 4294967294, %s1382_s12   ;;  %s1470_s15 = sadd.s32 1, %s1382_s12  }
   0x7   : > { %1675 = sst [smem:[#allocation12_spill]] %s1470_s15  ;;  %s225_s16 = sadd.s32 1, %s1378_s11 }
   0x8   : > { %s222_s17 = ssub.s32 %s1382_s12, %s1470_s15  ;;  %p235_p0 = scmp.ne.s32.totalorder %s1378_s11, %s1374_s10 }
   0x9   : > { %p223_p1 = scmp.eq.s32.totalorder %s222_s17, 0  ;;  %p236_p2 = scmp.eq.s32.totalorder %s1466_s13, 1 }
   0xa   : > { %p241_p3 = scmp.ne.s32.totalorder %s1374_s10, %s1370_s30  ;;  %p242_p4 = scmp.eq.s32.totalorder %s1005_s14, 1 }
   0xb   : > { %s1481_s18 = scalar_select %p223_p1, %s1378_s11, %s225_s16  }
   0xc   : > { %p1483_p5 = por %p236_p2, %p235_p0  ;;  %p1487_p6 = por %p242_p4, %p241_p3 }
   0xd   : > { %1676 = sst [smem:[#allocation13_spill]] %s1481_s18  ;;  %p1006_p7 = scmp.ge.s32.totalorder %s1382_s12, 1 }
   0xe   : > { %s1677_s19 = scalar_select %p1483_p5, 1, 0 }
   0xf   : > { %s1678_s20 = scalar_select %p1487_p6, 1, 0 }
  0x10   : > { %p249_p8 = scmp.lt.s32.totalorder %s1382_s12, 3  ;;  %p1668_p9 = scmp.eq.s32.totalorder %s1466_s13, 0 }
  0x11   : > { %s1384_s22 = smov [#allocation2]   ;;  %s1385_s25 = smov [#allocation5]  }
  0x12   : > { %p1494_p10 = pnand %p1006_p7, %p249_p8  ;;  %s273_s23 = sshll.u32 %s1384_s22, 4  ;;  %s274_s23 = int_to_ptr.vmem [resolvable:$true] %s273_s23 }
  0x13   : > { %s289_s26 = sshll.u32 %s1385_s25, 4  ;;  %s1256_s29 = scalar_lea.hbm %s1663_s5, 1024  ;;  %s1506_s26 = int_to_ptr.vmem [resolvable:$true] %s289_s26 }
  0x14   : > { %s1679_s21 = scalar_select %p1494_p10, 1, 0 }
  0x15   : > { %p1150_p11 = pneg %p1494_p10  ;;  %p1257_p13 = scmp.ne.s32.totalorder %s1663_s5, %s1256_s29 }
  0x16   : > { %p1263_p3 = scmp.lt.u32.totalorder %s1256_s29, %s1663_s5 }
  0x17   : > { %p1502_p12 = pnand %p1668_p9, %p1150_p11 }
  0x19   : > { %p1258_p0 = pneg %p1502_p12 }
  0x1b   : > { %p1259_p1 = pnand %p1258_p0, %p1257_p13 }
  0x1d   : > { %p1260_p2 = pneg %p1259_p1 }
  0x1f   : > { %p1265_p4 = pnand %p1263_p3, %p1260_p2 }
  0x21   : > { %1268 = shalt.err (!%p1265_p4)
}
  0x22   : > { %s1269_s25 = scalar_lea.vmem %s274_s23, 1024  ;;  %p1277_p9 = scmp.lt.s32.totalorder %s274_s23, %s274_s23 }
  0x23   : > { %p1270_p7 = scmp.ne.s32.totalorder %s274_s23, %s1269_s25  ;;  %p1278_p6 = scmp.lt.s32.totalorder %s1269_s25, %s1269_s25 }
  0x25   : > { %p1272_p8 = pnand %p1270_p7, %p1258_p0  ;;  %p1279_p5 = por %p1278_p6, %p1277_p9 }
  0x27   : > { %p1273_p11 = pneg %p1272_p8 }
  0x29   : > { %p1280_p10 = pnand %p1279_p5, %p1273_p11 }
  0x2b   : > { %1283 = shalt.err (!%p1280_p10)
}
  0x2c   : > { %s1386_s27 = smov 64   ;;  %s1387_s28 = smov 4  }
  0x2d   : > { %1153 = dma.hbm_to_vmem [thread:$0]  (!%p1502_p12), %s1663_s5, 1024, %s274_s23, [#allocation3], %s1386_s27, %s1386_s27, %s1387_s28  }
  0x2e   : > { %s1284_s22 = scalar_lea.hbm %s1665_s7, 1024 }
  0x2f   : > { %p1285_p13 = scmp.ne.s32.totalorder %s1665_s7, %s1284_s22  ;;  %p1291_p9 = scmp.lt.u32.totalorder %s1284_s22, %s1665_s7 }
  0x31   : > { %p1287_p5 = pnand %p1285_p13, %p1258_p0 }
  0x33   : > { %p1288_p6 = pneg %p1287_p5 }
  0x35   : > { %p1293_p10 = pnand %p1291_p9, %p1288_p6 }
  0x37   : > { %1296 = shalt.err (!%p1293_p10)
}
  0x38   : > { %s1297_s23 = scalar_lea.vmem %s1506_s26, 1024  ;;  %p1305_p4 = scmp.lt.s32.totalorder %s1506_s26, %s1506_s26 }
  0x39   : > { %p1298_p1 = scmp.ne.s32.totalorder %s1506_s26, %s1297_s23  ;;  %p1306_p7 = scmp.lt.s32.totalorder %s1297_s23, %s1297_s23 }
  0x3b   : > { %p1300_p2 = pnand %p1298_p1, %p1258_p0  ;;  %p1307_p8 = por %p1306_p7, %p1305_p4 }
  0x3d   : > { %p1301_p3 = pneg %p1300_p2 }
  0x3f   : > { %p1308_p11 = pnand %p1307_p8, %p1301_p3 }
  0x41   : > { %1311 = shalt.err (!%p1308_p11)
}
  0x42   : > { %1156 = dma.hbm_to_vmem [thread:$0]  (!%p1502_p12), %s1665_s7, 1024, %s1506_s26, [#allocation6], %s1386_s27, %s1386_s27, %s1387_s28  }
  0x43   : > { %p1681_p13 = scmp.ne.s32.totalorder %s1679_s21, 0 }
  0x44   : > { %p1682_p5 = scmp.eq.s32.totalorder (!%p1681_p13), %s1466_s13, 0 }
  0x45   : > { %317 = sbr.rel (%p1681_p13) target bundleno = 1250 (0x4e2), region = 56 }
  0x4c   : > { %1357 = dma.done.wait (%p1682_p5), [#allocation3], 1024   ;;  %p1683_p0 = pmov %p1682_p5 }
  0x4e   : > { %1359 = vsyncadd (%p1683_p0), [#allocation3], 4294966272  ;;  %p1684_p6 = pmov %p1683_p0 }
  0x4f   : > { %p1685_p9 = pmov %p1683_p0 }
  0x50   : > { %1361 = dma.done.wait (%p1684_p6), [#allocation6], 1024  }
  0x51   : > { %1363 = vsyncadd (%p1685_p9), [#allocation6], 4294966272  ;;  %s1014_s18 = sshll.u32 %s1466_s13, 2  ;;  %v1388_v0 = vmov 0   ;;  %v1216_v5 = vld [vmem:[%s1661_s3] sm:$0xff]   ;;  %v1389_v6 = vmov 1   ;;  %v391_v26 = vlaneseq }
  0x52   : > { %1209 = vset.pattern.permute.xlu1 %v1388_v0  ;;  %1208 = vset.pattern.permute.xlu0 %v1388_v0  ;;  %p358_p12 = scmp.lt.s32.totalorder %s1014_s18, 7  ;;  %v1217_v7 = vld [vmem:[%s1661_s3 + $0x8] sm:$0xff]   ;;  %v1218_v8 = vld [vmem:[%s1661_s3 + $0x10] sm:$0xff]   ;;  %v1390_v9 = vmov 2   ;;  %v1219_v10 = vld [vmem:[%s1661_s3 + $0x18] sm:$0xff]   ;;  %v1391_v11 = vmov 3  }
  0x53   : > { %1080 = vmatprep.subr.bf16.mxu0 %v1216_v5  ;;  %v1220_v12 = vld [vmem:[%s1661_s3 + $0x20] sm:$0xff]   ;;  %v1221_v13 = vld [vmem:[%s1661_s3 + $0x28] sm:$0xff]   ;;  %v1222_v14 = vld [vmem:[%s1661_s3 + $0x30] sm:$0xff]   ;;  %v392_v29 = vshrl.u32 %v391_v26, 7  ;;  %p1686_p1 = scmp.ne.s32.totalorder %s1677_s19, 0  ;;  %s1392_s22 = smov [#allocation7]  }
  0x54   : > { %s1694_s18 = smov (!%p358_p12, %s1014_s18), 7  ;;  %1081 = vmatpush3.bf16.msra.mxu0 %v1216_v5  ;;  %v1223_v15 = vld [vmem:[%s1661_s3 + $0x38] sm:$0xff]   ;;  %v1224_v16 = vld [vmem:[#allocation2] sm:$0xff]   ;;  %v1225_v17 = vld [vmem:[#allocation2 + $0x8] sm:$0xff]   ;;  %s1316_s25 = sshll.u32 %s1392_s22, 4  ;;  %s1317_s25 = int_to_ptr.vmem [resolvable:$false] %s1316_s25 }
  0x55   : > { %s1015_s21 = sshll.u32 %s1694_s18, 3  ;;  %1082 = vmatprep.subr.bf16.mxu0 %v1217_v7  ;;  %1100 = vmatprep.subr.bf16.mxu1 %v1224_v16  ;;  %v1226_v18 = vld [vmem:[#allocation2 + $0x10] sm:$0xff]   ;;  %v1227_v19 = vld [vmem:[#allocation2 + $0x18] sm:$0xff]   ;;  %v1228_v20 = vld [vmem:[#allocation2 + $0x20] sm:$0xff]   ;;  %v393_v32 = vsub.s32 0, %v392_v29  ;;  %v427_v34 = vsub.s32 1, %v392_v29 }
  0x56   : > { %s361_s27 = scalar_lea.vmem %s1658_s0, %s1015_s21  ;;  %1101 = vmatpush3.bf16.msra.mxu1 %v1224_v16  ;;  %v1229_v21 = vld [vmem:[#allocation2 + $0x28] sm:$0xff]   ;;  %v369_v33 = vld [vmem:[%s1659_s1] sm:$0xf]  ;;  %v455_v38 = vsub.s32 2, %v392_v29  ;;  %v483_v39 = vsub.s32 3, %v392_v29  ;;  %v1236_v26 = vld [vmem:[#allocation5 + $0x20] sm:$0xff]  }
  0x57   : > { %v367_v1 = vld [vmem:[%s361_s27 + $0x10] sm:$0xff]  ;;  %v365_v2 = vld [vmem:[%s361_s27] sm:$0xff]  ;;  %v368_v3 = vld [vmem:[%s361_s27 + $0x18] sm:$0xff]  ;;  %1102 = vmatprep.subr.bf16.mxu1 %v1225_v17  ;;  %v394_v37 = vrot.slane %v369_v33, %v393_v32  ;;  %v428_v42 = vrot.slane %v369_v33, %v427_v34  ;;  %s354_s21 = sand.u32 1, %s1374_s10   ;;  %s1318_s23 = scalar_lea.vmem %s1317_s25, 1024 }
  0x58   : > { %383 = vperm.xlu1 %1209, %v367_v1   ;;  %373 = vperm.xlu0 %1208, %v365_v2   ;;  %v366_v4 = vld [vmem:[%s361_s27 + $0x8] sm:$0xff]  ;;  %v456_v44 = vrot.slane %v369_v33, %v455_v38  ;;  %v1016_v45 = vld [vmem:[%s1660_s2] ss:$0 sm:$0xff]  ;;  %v484_v47 = vrot.slane %v369_v33, %v483_v39  ;;  %s1013_s24 = sshll.u32 %s354_s21, 5  ;;  %s1049_s27 = sshll.u32 %s1466_s13, 9 }
  0x59   : > { %1083 = vmatpush3.bf16.msra.mxu0 %v1217_v7  ;;  %s356_s26 = scalar_lea.vmem [#allocation7], %s1013_s24  ;;  %s1613_s16 = scalar_lea.hbm %s1667_s9, %s1049_s27 }
  0x5a   : > { %1084 = vmatprep.subr.bf16.mxu0 %v1218_v8  ;;  %1103 = vmatpush3.bf16.msra.mxu1 %v1225_v17  ;;  %s921_s28 = sshll.u32 %s356_s26, 4  ;;  %s1617_s17 = scalar_lea.sflag [#allocation4], %s354_s21  ;;  %s1615_s28 = int_to_ptr.vmem [resolvable:$true] %s921_s28 }
  0x5b   : > { %1104 = vmatprep.subr.bf16.mxu1 %v1226_v18  ;;  %s1312_s13 = scalar_lea.vmem %s1615_s28, 512  ;;  %p1319_p4 = scmp.lt.s32.totalorder %s1615_s28, %s1317_s25 }
  0x5c   : > { %388 = vperm.xlu1 %1209, %v368_v3   ;;  %378 = vperm.xlu0 %1208, %v366_v4   ;;  %p1313_p10 = scmp.ne.s32.totalorder %s1615_s28, %s1312_s13  ;;  %p1320_p7 = scmp.lt.s32.totalorder %s1318_s23, %s1312_s13 }
  0x5d   : > { %1085 = vmatpush3.bf16.msra.mxu0 %v1218_v8 }
  0x5e   : > { %1086 = vmatprep.subr.bf16.mxu0 %v1219_v10  ;;  %1105 = vmatpush3.bf16.msra.mxu1 %v1226_v18  ;;  %p1314_p2 = pnand %p1313_p10, %p1686_p1  ;;  %p1321_p8 = por %p1320_p7, %p1319_p4 }
  0x5f   : > { %1106 = vmatprep.subr.bf16.mxu1 %v1227_v19 }
  0x60   : > { %1211 = vset.pattern.permute.xlu1 %v1389_v6  ;;  %1210 = vset.pattern.permute.xlu0 %v1389_v6  ;;  %p1315_p3 = pneg %p1314_p2 }
  0x61   : > { %414 = vperm.xlu1 %1211, %v366_v4   ;;  %410 = vperm.xlu0 %1210, %v365_v2  }
  0x62   : > { %1087 = vmatpush3.bf16.msra.mxu0 %v1219_v10  ;;  %1107 = vmatpush3.bf16.msra.mxu1 %v1227_v19  ;;  %p1322_p11 = pnand %p1321_p8, %p1315_p3 }
  0x63   : > { %1088 = vmatprep.subr.bf16.mxu0 %v1220_v12  ;;  %1108 = vmatprep.subr.bf16.mxu1 %v1228_v20 }
  0x65   : > { %418 = vperm.xlu1 %1211, %v367_v1   ;;  %422 = vperm.xlu0 %1210, %v368_v3  }
  0x66   : > { %1089 = vmatpush3.bf16.msra.mxu0 %v1220_v12  ;;  %1109 = vmatpush3.bf16.msra.mxu1 %v1228_v20  ;;  %v1230_v20 = vld [vmem:[#allocation2 + $0x30] sm:$0xff]  }
  0x67   : > { %1090 = vmatprep.subr.bf16.mxu0 %v1221_v13  ;;  %1110 = vmatprep.subr.bf16.mxu1 %v1229_v21 }
  0x69   : > { %1212 = vset.pattern.permute.xlu1 %v1390_v9  ;;  %1213 = vset.pattern.permute.xlu0 %v1390_v9 }
  0x6a   : > { %438 = vperm.xlu1 %1212, %v365_v2   ;;  %442 = vperm.xlu0 %1213, %v366_v4  }
  0x6b   : > { %1091 = vmatpush3.bf16.msra.mxu0 %v1221_v13  ;;  %1111 = vmatpush3.bf16.msra.mxu1 %v1229_v21  ;;  %v1231_v21 = vld [vmem:[#allocation2 + $0x38] sm:$0xff]  }
  0x6c   : > { %1092 = vmatprep.subr.bf16.mxu0 %v1222_v14  ;;  %1112 = vmatprep.subr.bf16.mxu1 %v1230_v20 }
  0x6e   : > { %446 = vperm.xlu1 %1212, %v367_v1   ;;  %1214 = vset.pattern.permute.xlu0 %v1391_v11 }
  0x6f   : > { %466 = vperm.xlu0 %1214, %v365_v2   ;;  %1093 = vmatpush3.bf16.msra.mxu0 %v1222_v14 }
  0x70   : > { %1094 = vmatprep.subr.bf16.mxu0 %v1223_v15  ;;  %1113 = vmatpush3.bf16.msra.mxu1 %v1230_v20 }
  0x71   : > { %1114 = vmatprep.subr.bf16.mxu1 %v1231_v21 }
  0x72   : > { %450 = vperm.xlu1 %1212, %v368_v3  }
  0x73   : > { %478 = vperm.xlu0 %1214, %v368_v3   ;;  %1095 = vmatpush3.bf16.msra.mxu0 %v1223_v15 }
  0x74   : > { %1115 = vmatpush3.bf16.msra.mxu1 %v1231_v21 }
  0x76   : > { %1215 = vset.pattern.permute.xlu1 %v1391_v11 }
  0x77   : > { %470 = vperm.xlu1 %1215, %v366_v4  }
  0x7b   : > { %474 = vperm.xlu1 %1215, %v367_v1  }
  0xd7   : > { %v384_v22 = vpop.permute.xlu1 %383  ;;  %v374_v23 = vpop.permute.xlu0 %373 }
  0xd8   : > { %v395_v40 = vmul.f32 %v394_v37, %v374_v23  ;;  %v397_v54 = vmul.f32 %v394_v37, %v384_v22  ;;  %v1232_v22 = vld [vmem:[#allocation5] sm:$0xff]   ;;  %v1233_v23 = vld [vmem:[#allocation5 + $0x8] sm:$0xff]  }
  0xd9   : > { %1120 = vmatprep.subr.bf16.mxu0 %v1232_v22 }
  0xda   : > { %v405_v49 = vadd.f32 %v1016_v45, %v395_v40  ;;  %v407_v0 = vadd.f32 %v1016_v45, %v397_v54 }
  0xdb   : > { %v389_v24 = vpop.permute.xlu1 %388  ;;  %v379_v25 = vpop.permute.xlu0 %378 }
  0xdc   : > { %v396_v41 = vmul.f32 %v394_v37, %v379_v25  ;;  %v398_v46 = vmul.f32 %v394_v37, %v389_v24  ;;  %v1234_v24 = vld [vmem:[#allocation5 + $0x10] sm:$0xff]   ;;  %v1235_v25 = vld [vmem:[#allocation5 + $0x18] sm:$0xff]  }
  0xde   : > { %v406_v50 = vadd.f32 %v1016_v45, %v396_v41  ;;  %v408_v58 = vadd.f32 %v1016_v45, %v398_v46  ;;  %v1026_v45 = vld [vmem:[%s1664_s6] ss:$0 sm:$0xff] }
  0xe0   : > { %v415_v27 = vpop.permute.xlu1 %414  ;;  %v411_v28 = vpop.permute.xlu0 %410 }
  0xe1   : > { %v430_v51 = vmul.f32 %v428_v42, %v415_v27  ;;  %v429_v52 = vmul.f32 %v428_v42, %v411_v28  ;;  %v1237_v27 = vld [vmem:[#allocation5 + $0x28] sm:$0xff]   ;;  %v1017_v28 = vld [vmem:[%s1662_s4] ss:$0 sm:$0xff] }
  0xe3   : > { %v434_v60 = vadd.f32 %v430_v51, %v406_v50  ;;  %v433_v61 = vadd.f32 %v429_v52, %v405_v49 }
  0xe4   : > { %v419_v30 = vpop.permute.xlu1 %418  ;;  %v423_v31 = vpop.permute.xlu0 %422 }
  0xe5   : > { %v432_v55 = vmul.f32 %v428_v42, %v423_v31  ;;  %v431_v59 = vmul.f32 %v428_v42, %v419_v30 }
  0xe7   : > { %v436_v1 = vadd.f32 %v432_v55, %v408_v58  ;;  %v435_v8 = vadd.f32 %v431_v59, %v407_v0 }
  0xe9   : > { %v439_v35 = vpop.permute.xlu1 %438  ;;  %v443_v36 = vpop.permute.xlu0 %442 }
  0xea   : > { %v457_v56 = vmul.f32 %v456_v44, %v439_v35  ;;  %v458_v57 = vmul.f32 %v456_v44, %v443_v36 }
  0xec   : > { %v461_v4 = vadd.f32 %v457_v56, %v433_v61  ;;  %v462_v5 = vadd.f32 %v458_v57, %v434_v60  ;;  %v1035_v60 = vld [vmem:[%s1666_s8] ss:$0 sm:$0xff] }
  0xed   : > { %v447_v43 = vpop.permute.xlu1 %446 }
  0xee   : > { %v467_v48 = vpop.permute.xlu0 %466  ;;  %v459_v6 = vmul.f32 %v456_v44, %v447_v43  ;;  %v1238_v43 = vld [vmem:[#allocation5 + $0x30] sm:$0xff]  }
  0xef   : > { %v485_v62 = vmul.f32 %v484_v47, %v467_v48 }
  0xf0   : > { %v463_v14 = vadd.f32 %v459_v6, %v435_v8 }
  0xf1   : > { %v451_v53 = vpop.permute.xlu1 %450  ;;  %v489_v11 = vadd.f32 %v485_v62, %v461_v4 }
  0xf2   : > { %v460_v63 = vmul.f32 %v456_v44, %v451_v53  ;;  %v479_v2 = vpop.permute.xlu0 %478  ;;  %v1239_v44 = vld [vmem:[#allocation5 + $0x38] sm:$0xff]  }
  0xf3   : > { %v488_v10 = vmul.f32 %v484_v47, %v479_v2 }
  0xf4   : > { %v464_v9 = vadd.f32 %v460_v63, %v436_v1 }
  0xf6   : > { %v471_v3 = vpop.permute.xlu1 %470  ;;  %v492_v17 = vadd.f32 %v488_v10, %v464_v9 }
  0xf7   : > { %v486_v7 = vmul.f32 %v484_v47, %v471_v3 }
  0xf9   : > { %v490_v12 = vadd.f32 %v486_v7, %v462_v5 }
  0xfa   : > { %v475_v13 = vpop.permute.xlu1 %474 }
  0xfb   : > { %v487_v15 = vmul.f32 %v484_v47, %v475_v13  ;;  %v493_v16 = vpack.c.bf16 %v490_v12, %v489_v11 }
  0xfd   : > { %v491_v18 = vadd.f32 %v487_v15, %v463_v14  ;;  %1096 = vmatprep.mubr.bf16.mxu0 %v493_v16 }
  0xff   : > { %v494_v19 = vpack.c.bf16 %v492_v17, %v491_v18 }
 0x101   : > { %1097 = vmatmul.mubr.bf16.vlgmr.msra.gmra.mrb[0].mxu0 %v494_v19 }
 0x102   : > { %1121 = vmatpush3.bf16.msra.mxu0 %v1232_v22 }
 0x103   : > { %1122 = vmatprep.subr.bf16.mxu0 %v1233_v23 }
 0x106   : > { %1123 = vmatpush3.bf16.msra.mxu0 %v1233_v23 }
 0x107   : > { %1124 = vmatprep.subr.bf16.mxu0 %v1234_v24 }
 0x10a   : > { %1125 = vmatpush3.bf16.msra.mxu0 %v1234_v24 }
 0x10b   : > { %1126 = vmatprep.subr.bf16.mxu0 %v1235_v25 }
 0x10e   : > { %1127 = vmatpush3.bf16.msra.mxu0 %v1235_v25 }
 0x10f   : > { %1128 = vmatprep.subr.bf16.mxu0 %v1236_v26 }
 0x112   : > { %1129 = vmatpush3.bf16.msra.mxu0 %v1236_v26 }
 0x113   : > { %1130 = vmatprep.subr.bf16.mxu0 %v1237_v27 }
 0x116   : > { %1131 = vmatpush3.bf16.msra.mxu0 %v1237_v27 }
 0x117   : > { %1132 = vmatprep.subr.bf16.mxu0 %v1238_v43 }
 0x11a   : > { %1133 = vmatpush3.bf16.msra.mxu0 %v1238_v43 }
 0x11b   : > { %1134 = vmatprep.subr.bf16.mxu0 %v1239_v44 }
 0x11e   : > { %1135 = vmatpush3.bf16.msra.mxu0 %v1239_v44 }
 0x1d4   : > { %v1098_v29 = vpop.f32.mrb[0].mxu0 }
 0x1d5   : > { %v609_v30 = vadd.f32 %v1098_v29, %v1017_v28  ;;  %v600_v31 = vpop.f32.mrb[1].mxu0 }
 0x1d6   : > { %v601_v32 = vadd.f32 %v1017_v28, %v600_v31  ;;  %v1099_v33 = vpop.f32.mrb[2].mxu0 }
 0x1d7   : > { %v612_v34 = vadd.f32 %v1099_v33, %v1017_v28  ;;  %v603_v35 = vpop.f32.mrb[3].mxu0  ;;  %v617_v37 = vmax.f32 %v609_v30, 0.0 }
 0x1d8   : > { %v604_v36 = vadd.f32 %v1017_v28, %v603_v35  ;;  %v615_v39 = vmax.f32 %v601_v32, 0.0 }
 0x1d9   : > { %v618_v38 = vmax.f32 %v612_v34, 0.0 }
 0x1da   : > { %v616_v40 = vmax.f32 %v604_v36, 0.0 }
 0x1db   : > { %v620_v41 = vpack.c.bf16 %v618_v38, %v617_v37 }
 0x1dc   : > { %v619_v42 = vpack.c.bf16 %v616_v40, %v615_v39 }
 0x1de   : > { %1116 = vmatprep.mubr.bf16.mxu1 %v619_v42 }
 0x1df   : > { %1117 = vmatmul.mubr.bf16.vlgmr.msra.gmra.mrb[0].mxu1 %v620_v41 }
 0x2b2   : > { %v1118_v46 = vpop.f32.mrb[0].mxu1 }
 0x2b3   : > { %v735_v47 = vadd.f32 %v1118_v46, %v1026_v45  ;;  %v726_v48 = vpop.f32.mrb[1].mxu1 }
 0x2b4   : > { %v727_v49 = vadd.f32 %v1026_v45, %v726_v48  ;;  %v1119_v50 = vpop.f32.mrb[2].mxu1 }
 0x2b5   : > { %v738_v51 = vadd.f32 %v1119_v50, %v1026_v45  ;;  %v729_v52 = vpop.f32.mrb[3].mxu1  ;;  %v743_v54 = vmax.f32 %v735_v47, 0.0 }
 0x2b6   : > { %v730_v53 = vadd.f32 %v1026_v45, %v729_v52  ;;  %v741_v56 = vmax.f32 %v727_v49, 0.0 }
 0x2b7   : > { %v744_v55 = vmax.f32 %v738_v51, 0.0 }
 0x2b8   : > { %v742_v57 = vmax.f32 %v730_v53, 0.0 }
 0x2b9   : > { %v746_v58 = vpack.c.bf16 %v744_v55, %v743_v54 }
 0x2ba   : > { %v745_v59 = vpack.c.bf16 %v742_v57, %v741_v56 }
 0x2bc   : > { %1136 = vmatprep.mubr.bf16.mxu0 %v745_v59 }
 0x2bd   : > { %1137 = vmatmul.mubr.bf16.vlgmr.msra.gmra.mrb[4].mxu0 %v746_v58 }
 0x390   : > { %v1138_v61 = vpop.f32.mrb[4].mxu0 }
 0x391   : > { %v852_v62 = vpop.f32.mrb[5].mxu0  ;;  %v861_v4 = vadd.f32 %v1138_v61, %v1035_v60 }
 0x392   : > { %v853_v63 = vadd.f32 %v1035_v60, %v852_v62  ;;  %v1139_v0 = vpop.f32.mrb[6].mxu0 }
 0x393   : > { %v855_v1 = vpop.f32.mrb[7].mxu0  ;;  %v864_v3 = vadd.f32 %v1139_v0, %v1035_v60 }
 0x394   : > { %v856_v2 = vadd.f32 %v1035_v60, %v855_v1  ;;  %867 = vmax.xlane.f32.xlu1 %v853_v63 }
 0x396   : > { %869 = vmax.xlane.f32.xlu0 %v856_v2 }
 0x398   : > { %873 = vmax.xlane.f32.xlu1 %v864_v3 }
 0x39a   : > { %871 = vmax.xlane.f32.xlu0 %v861_v4 }
 0x421   : > { %v868_v5 = vpop.xlane.xlu1 %867 }
 0x422   : > { %v875_v6 = vsub.f32 %v853_v63, %v868_v5 }
 0x423   : > { %v870_v7 = vpop.xlane.xlu0 %869 }
 0x424   : > { %v879_v8 = vmul.f32 1.442695, %v875_v6  ;;  %v876_v9 = vsub.f32 %v856_v2, %v870_v7 }
 0x425   : > { %v874_v10 = vpop.xlane.xlu1 %873 }
 0x426   : > { %1240 = vpow2.f32 %v879_v8  ;;  %v881_v11 = vmul.f32 1.442695, %v876_v9  ;;  %v878_v12 = vsub.f32 %v864_v3, %v874_v10 }
 0x427   : > { %v872_v13 = vpop.xlane.xlu0 %871 }
 0x428   : > { %1242 = vpow2.f32 %v881_v11  ;;  %v885_v14 = vmul.f32 1.442695, %v878_v12  ;;  %v877_v15 = vsub.f32 %v861_v4, %v872_v13 }
 0x42a   : > { %v883_v16 = vmul.f32 1.442695, %v877_v15  ;;  %1244 = vpow2.f32 %v885_v14 }
 0x42c   : > { %1246 = vpow2.f32 %v883_v16 }
 0x430   : > { %v1241_v17 = vpop.eup %1240 }
 0x431   : > { %887 = vadd.xlane.f32.xlu0 %v1241_v17 }
 0x432   : > { %v1243_v18 = vpop.eup %1242 }
 0x433   : > { %889 = vadd.xlane.f32.xlu1 %v1243_v18 }
 0x434   : > { %v1245_v19 = vpop.eup %1244 }
 0x436   : > { %v1247_v20 = vpop.eup %1246 }
 0x437   : > { %891 = vadd.xlane.f32.xlu0 %v1247_v20  ;;  %893 = vadd.xlane.f32.xlu1 %v1245_v19 }
 0x4be   : > { %v888_v21 = vpop.xlane.xlu0 %887 }
 0x4bf   : > { %1248 = vrcp.f32 %v888_v21 }
 0x4c0   : > { %v890_v22 = vpop.xlane.xlu1 %889 }
 0x4c1   : > { %1250 = vrcp.f32 %v890_v22 }
 0x4c4   : > { %v892_v23 = vpop.xlane.xlu0 %891  ;;  %v894_v24 = vpop.xlane.xlu1 %893 }
 0x4c5   : > { %1252 = vrcp.f32 %v892_v23 }
 0x4c6   : > { %1254 = vrcp.f32 %v894_v24 }
 0x4c9   : > { %v1249_v25 = vpop.eup %1248 }
 0x4ca   : > { %v896_v26 = vmul.f32 %v1249_v25, %v1241_v17 }
 0x4cb   : > { %v1251_v27 = vpop.eup %1250 }
 0x4cc   : > { %903 = vst [vmem:[%s356_s26] sm:$0xff] %v896_v26  ;;  %v898_v28 = vmul.f32 %v1251_v27, %v1243_v18 }
 0x4ce   : > { %904 = vst [vmem:[%s356_s26 + $0x8] sm:$0xff] %v898_v28 }
 0x4cf   : > { %v1253_v29 = vpop.eup %1252 }
 0x4d0   : > { %v1255_v30 = vpop.eup %1254  ;;  %v900_v31 = vmul.f32 %v1253_v29, %v1247_v20 }
 0x4d1   : > { %v902_v32 = vmul.f32 %v1255_v30, %v1245_v19 }
 0x4d2   : > { %905 = vst [vmem:[%s356_s26 + $0x10] sm:$0xff] %v900_v31 }
 0x4d3   : > { %906 = vst [vmem:[%s356_s26 + $0x18] sm:$0xff] %v902_v32 }
 0x4d4   : > { %1325 = shalt.err (!%p1322_p11)
}
 0x4d5   : > { %s1326_s11 = scalar_lea.hbm %s1613_s16, 512  ;;  %s1330_s21 = scalar_lea.hbm %s1667_s9, 1024 }
 0x4d6   : > { %p1327_p13 = scmp.ne.s32.totalorder %s1613_s16, %s1326_s11  ;;  %p1331_p6 = scmp.lt.u32.totalorder %s1613_s16, %s1667_s9 }
 0x4d7   : > { %p1332_p9 = scmp.lt.u32.totalorder %s1330_s21, %s1326_s11  ;;  %p1334_p10 = scmp.lt.u32.totalorder %s1326_s11, %s1613_s16 }
 0x4d8   : > { %p1328_p5 = pnand %p1327_p13, %p1686_p1 }
 0x4d9   : > { %p1333_p12 = por %p1332_p9, %p1331_p6 }
 0x4da   : > { %p1329_p0 = pneg %p1328_p5 }
 0x4db   : > { %p1335_p2 = por %p1334_p10, %p1333_p12 }
 0x4dd   : > { %p1336_p3 = pnand %p1335_p2, %p1329_p0 }
 0x4df   : > { %1339 = shalt.err (!%p1336_p3)
}
 0x4e0   : > { %s1393_s27 = smov 128   ;;  %s1394_s29 = smov 8  }
 0x4e1   : > { %1148 = dma.vmem_to_hbm [thread:$0]  (%p1686_p1), %s1615_s28, 512, %s1613_s16, %s1617_s17, %s1393_s27, %s1393_s27, %s1394_s29  }
 0x4e2 PF: > { %p1165_p4 = scmp.ge.s32.totalorder %s1382_s12, 2  ;;  %s936_s14 = sand.u32 1, %s1370_s30  }
 0x4e3   : > { %p1687_p7 = scmp.ne.s32.totalorder %s1678_s20, 0  ;;  %s937_s13 = scalar_lea.sflag [#allocation4], %s936_s14 }
 0x4e5   : > { %p1158_p8 = pnand %p1165_p4, %p1687_p7 }
 0x4e7   : > { %1365 = dma.done.wait (!%p1158_p8), %s937_s13, 512  }
 0x4e8   : > { %1367 = vsyncadd (!%p1158_p8), %s937_s13, 4294966784  ;;  %s1688_s12 = sld [smem:[#allocation12_spill]]  ;;  %s1689_s22 = sld [smem:[#allocation11_spill]] }
 0x4e9   : > { %s1690_s11 = sld [smem:[#allocation13_spill]]  ;;  %s1691_s30 = smov %s1374_s10 }
 0x4ee   : > { %p21_p11 = scmp.ge.s32.totalorder %s1688_s12, 4   ;;  %s1692_s10 = smov %s1689_s22 }
 0x4f0   :  { %23 = sbr.rel (!%p21_p11) target bundleno = 5 (0x5), region = 100 }
 0x4f7   :  { %942 = vsyncpa [#allocation3], 1 }
 0x4f8   :  { %944 = vsyncpa [#allocation3 + $0x1], 1 }
 0x4f9   :  { %945 = vsyncpa [#allocation6], 1 }
 0x4fa   :  { %946 = vsyncpa [#allocation4], 1 }
 0x4fb   :  { %948 = vsyncpa [#allocation4 + $0x1], 1 }

</bundles_post_ra>
